<compile_context>
chip_gen: v5e
topology: v5e:2x2
jax: 0.10.0
libtpu: 0.0.40
codegen_flags: <defaults>
</compile_context>

<pallas_src>
import functools
import re

import jax
import jax.numpy as jnp
from jax import lax
from jax.experimental import pallas as pl
from jax.experimental.pallas import tpu as pltpu


def _round_up(x, m):
    return ((x + m - 1) // m) * m


def _cdiv(a, b):
    return -(-a // b)


def _tpu_generation():
    """Best-effort TPU generation number (0 if unknown)."""
    try:
        kind = jax.devices()[0].device_kind.lower()
    except Exception:
        return 0
    m = re.search(r"(\d+)", kind)
    return int(m.group(1)) if m else 0


def _rnd_fused_kernel(x_ref, w_ref, b_ref, out_ref, acc_ref, *,
                      d_pad, width, tb, tiles_per_split, true_batch,
                      mask_rows, act_dtype):
    """One batch tile: fused predictor+target MLP -> squared diff -> vreg accumulate.

    w_ref row layout:  [0, d_pad)                 W1f (d_pad, width)
                       [d_pad, d_pad+width)       W2f (width, width)   block-diag
                       [d_pad+width, d_pad+2w)    W3f (width, width)   [[-W3p],[W3t]], zero-padded cols
    b_ref row layout:  0 -> b1f, 1 -> b2f, 2 -> (b3t - b3p) zero-padded, rest zero.
    out_ref: (1, 8, width) per-split partial sum of squared diffs (unscaled).
    acc_ref: (8, width) f32 persistent scratch accumulator.
    """
    s = pl.program_id(0)   # core-split axis ("parallel")
    i = pl.program_id(1)   # batch-tile axis within the split ("arbitrary")

    @pl.when(i == 0)
    def _init():
        acc_ref[...] = jnp.zeros_like(acc_ref)

    mm_dtype = w_ref.dtype
    x = x_ref[...]                                   # (tb, d_pad), mm_dtype

    w1 = w_ref[0:d_pad, :]
    w2 = w_ref[d_pad:d_pad + width, :]
    w3 = w_ref[d_pad + width:d_pad + 2 * width, :]
    b1 = b_ref[0:1, :].astype(act_dtype)
    b2 = b_ref[1:2, :].astype(act_dtype)
    b3 = b_ref[2:3, :]                               # stays f32

    # Layer 1: lane-full fused matmul; bias add + tanh in act_dtype.
    h = jnp.dot(x, w1, preferred_element_type=jnp.float32)
    h = jnp.tanh(h.astype(act_dtype) + b1).astype(mm_dtype)
    # Layer 2: block-diagonal fused hidden layer.
    h = jnp.dot(h, w2, preferred_element_type=jnp.float32)
    h = jnp.tanh(h.astype(act_dtype) + b2).astype(mm_dtype)
    # Layer 3 emits diff = target(x) - predictor(x) directly (padded lanes are 0).
    diff = jnp.dot(h, w3, preferred_element_type=jnp.float32) + b3

    sq = diff * diff                                 # (tb, width) f32

    def _accumulate(v):
        # (tb, width) -> (tb//8, 8, width); sum over leading axis = pure vreg adds.
        acc_ref[...] += jnp.sum(v.reshape(tb // 8, 8, width), axis=0)

    if mask_rows:  # static: only emitted when the batch was padded
        row0 = (s * tiles_per_split + i) * tb
        tile_has_padding = row0 + tb > true_batch

        @pl.when(tile_has_padding)
        def _masked():
            rows = row0 + lax.broadcasted_iota(jnp.int32, (tb, 1), 0)
            _accumulate(jnp.where(rows < true_batch, sq, 0.0))

        @pl.when(jnp.logical_not(tile_has_padding))
        def _unmasked():
            _accumulate(sq)
    else:
        _accumulate(sq)

    @pl.when(i == pl.num_programs(1) - 1)
    def _finalize():
        out_ref[...] = acc_ref[...].reshape(1, 8, width)


def _pack_fused_params(predictor_params, target_params, matmul_dtype):
    """Pack both 3-layer MLPs into one weight slab + one bias slab."""
    w1p, b1p, w2p, b2p, w3p, b3p = predictor_params
    w1t, b1t, w2t, b2t, w3t, b3t = target_params
    input_dim, hidden = w1p.shape
    output_dim = w3p.shape[1]
    assert w2p.shape == (hidden, hidden) and w2t.shape == (hidden, hidden)
    assert w1t.shape == (input_dim, hidden) and w3t.shape == (hidden, output_dim)

    width = 2 * hidden                 # 128 for hidden=64 -> lane-full matmuls
    assert width == 128, "fused layout assumes hidden_sizes=[64, 64]"
    assert output_dim <= width
    d_pad = _round_up(input_dim, 16)   # 16 sublanes so bf16 slab slices stay packed

    w1 = jnp.zeros((d_pad, width), jnp.float32)
    w1 = w1.at[:input_dim, :hidden].set(w1p).at[:input_dim, hidden:].set(w1t)

    w2 = jnp.zeros((width, width), jnp.float32)
    w2 = w2.at[:hidden, :hidden].set(w2p).at[hidden:, hidden:].set(w2t)

    w3 = jnp.zeros((width, width), jnp.float32)
    w3 = w3.at[:hidden, :output_dim].set(-w3p).at[hidden:, :output_dim].set(w3t)

    w_slab = jnp.concatenate([w1, w2, w3], axis=0).astype(matmul_dtype)

    b_slab = jnp.zeros((8, width), jnp.float32)      # padded to 8 sublanes
    b_slab = b_slab.at[0, :hidden].set(b1p[0]).at[0, hidden:].set(b1t[0])
    b_slab = b_slab.at[1, :hidden].set(b2p[0]).at[1, hidden:].set(b2t[0])
    b_slab = b_slab.at[2, :output_dim].set((b3t - b3p)[0])

    return w_slab, b_slab, d_pad, width, input_dim, output_dim


def rnd_exploration_bonus(x, predictor_params, target_params, *,
                          matmul_dtype=jnp.bfloat16, batch_tile=None,
                          num_core_splits=None):
    """Returns a scalar f32 exploration bonus = mean((target(x) - predictor(x))**2)."""
    B, input_dim = x.shape
    gen = _tpu_generation()

    # Generation-aware defaults: big tiles (amortize ~0.35us/step), capped on
    # <=v5 (16 MiB default scoped VMEM, no bf16 VPU/EUP so larger buys less).
    if batch_tile is None:
        batch_tile = 4096 if gen >= 6 else 2048
    if num_core_splits is None:
        num_core_splits = 2 if gen >= 7 else 1       # v7x: 2 TensorCores/chip
    act_dtype = (jnp.bfloat16
                 if (gen >= 6 and matmul_dtype == jnp.bfloat16)
                 else jnp.float32)

    w_slab, b_slab, d_pad, width, p_in, output_dim = _pack_fused_params(
        predictor_params, target_params, matmul_dtype)
    assert p_in == input_dim

    # Padding-aware tiling: number of tiles hugs B, tb balanced across tiles.
    n_tiles = max(1, _cdiv(B, batch_tile))
    num_splits = num_core_splits if n_tiles >= num_core_splits else 1
    n_tiles = _round_up(n_tiles, num_splits)
    tb = _round_up(_cdiv(B, n_tiles), 8)
    b_pad = n_tiles * tb
    tiles_per_split = n_tiles // num_splits
    mask_rows = b_pad != B

    if b_pad != B or d_pad != input_dim:
        x_p = jnp.zeros((b_pad, d_pad), x.dtype).at[:B, :input_dim].set(x)
    else:
        x_p = x
    x_p = x_p.astype(matmul_dtype)

    kernel = functools.partial(
        _rnd_fused_kernel, d_pad=d_pad, width=width, tb=tb,
        tiles_per_split=tiles_per_split, true_batch=B,
        mask_rows=mask_rows, act_dtype=act_dtype)

    flops = 2 * b_pad * (d_pad * width + 2 * width * width)
    bytes_accessed = (x_p.size * x_p.dtype.itemsize
                      + w_slab.size * w_slab.dtype.itemsize
                      + b_slab.size * b_slab.dtype.itemsize
                      + num_splits * 8 * width * 4)

    partials = pl.pallas_call(
        kernel,
        grid=(num_splits, tiles_per_split),
        in_specs=[
            # x tile (BlockSpec double-buffered / pipelined across the grid)
            pl.BlockSpec((tb, d_pad), lambda s, i: (s * tiles_per_split + i, 0)),
            # weight slab + bias slab: VMEM-resident (constant index_map)
            pl.BlockSpec(w_slab.shape, lambda s, i: (0, 0)),
            pl.BlockSpec(b_slab.shape, lambda s, i: (0, 0)),
        ],
        out_specs=pl.BlockSpec((1, 8, width), lambda s, i: (s, 0, 0)),
        out_shape=jax.ShapeDtypeStruct((num_splits, 8, width), jnp.float32),
        scratch_shapes=[pltpu.VMEM((8, width), jnp.float32)],
        compiler_params=pltpu.CompilerParams(
            dimension_semantics=("parallel", "arbitrary")),
        cost_estimate=pl.CostEstimate(
            flops=flops,
            transcendentals=2 * b_pad * width,
            bytes_accessed=bytes_accessed),
    )(x_p, w_slab, b_slab)

    inv_n = 1.0 / float(B * output_dim)
    return jnp.sum(partials) * inv_n      # tiny cross-lane reduce + 1/n, once


def _init_linear(key, fan_in, fan_out):
    """torch.nn.Linear default init (U[-k, k], k=1/sqrt(fan_in)); weight stored (in, out)."""
    k = 1.0 / jnp.sqrt(jnp.asarray(fan_in, jnp.float32))
    kw, kb = jax.random.split(key)
    w = jax.random.uniform(kw, (fan_in, fan_out), jnp.float32, -k, k)
    b = jax.random.uniform(kb, (1, fan_out), jnp.float32, -k, k)
    return w, b


def init_feedforward(key, input_dim, hidden_sizes, output_dim):
    sizes = [input_dim] + list(hidden_sizes) + [output_dim]
    params = []
    keys = jax.random.split(key, len(sizes) - 1)
    for kk, (fi, fo) in zip(keys, zip(sizes[:-1], sizes[1:])):
        w, b = _init_linear(kk, fi, fo)
        params.extend([w, b])
    return tuple(params)


if __name__ == "__main__":
    # Small shapes consistent with the module: a flat state vector per sample.
    input_dim = 16
    output_dim = 8
    hidden_sizes = [64, 64]

    root = jax.random.PRNGKey(0)
    k_x, k_pred, k_targ = jax.random.split(root, 3)

    predictor_params = init_feedforward(k_pred, input_dim, hidden_sizes, output_dim)
    target_params = init_feedforward(k_targ, input_dim, hidden_sizes, output_dim)

    # Pure-JAX reference (same math as the PyTorch module).
    def mlp_ref(xv, p):
        w1, b1, w2, b2, w3, b3 = p
        h = jnp.tanh(xv @ w1 + b1)
        h = jnp.tanh(h @ w2 + b2)
        return h @ w3 + b3

    def ref_bonus(xv):
        return jnp.mean((mlp_ref(xv, target_params) - mlp_ref(xv, predictor_params)) ** 2)

    # Case 1: batch multiple of 8 (no row padding); f32 (exact) + bf16 (fast) paths.
    x8 = jax.random.normal(k_x, (8, input_dim), jnp.float32)
    bonus_f32 = rnd_exploration_bonus(x8, predictor_params, target_params,
                                      matmul_dtype=jnp.float32)
    bonus_bf16 = rnd_exploration_bonus(x8, predictor_params, target_params,
                                       matmul_dtype=jnp.bfloat16)
    # Case 2: ragged batch (exercises the padded-row mask path).
    x10 = jax.random.normal(jax.random.PRNGKey(1), (10, input_dim), jnp.float32)
    bonus_ragged = rnd_exploration_bonus(x10, predictor_params, target_params,
                                         matmul_dtype=jnp.float32)
    jax.block_until_ready((bonus_f32, bonus_bf16, bonus_ragged))

    ref8 = ref_bonus(x8)
    ref10 = ref_bonus(x10)

    assert jnp.allclose(bonus_f32, ref8, rtol=1e-4, atol=1e-5), (bonus_f32, ref8)
    assert jnp.allclose(bonus_ragged, ref10, rtol=1e-4, atol=1e-5), (bonus_ragged, ref10)
    assert jnp.allclose(bonus_bf16, ref8, rtol=1.5e-1, atol=2e-3), (bonus_bf16, ref8)

    print("KERNEL_OK")
</pallas_src>

<mosaic_0001>
module attributes {stable_mosaic.version = 11 : i64} {
  func.func @_rnd_fused_kernel(%arg0: i32, %arg1: i32, %arg2: memref<8x16xf32, #tpu.memory_space<vmem>>, %arg3: memref<272x128xf32, #tpu.memory_space<vmem>>, %arg4: memref<8x128xf32, #tpu.memory_space<vmem>>, %arg5: memref<1x8x128xf32, #tpu.memory_space<vmem>>, %arg6: memref<8x128xf32, #tpu.memory_space<vmem>>) attributes {dimension_semantics = [#tpu.dimension_semantics<parallel>, #tpu.dimension_semantics<arbitrary>], iteration_bounds = array<i64: 1, 1>, scalar_prefetch = 0 : i64, scratch_operands = 1 : i64, tpu.core_type = #tpu.core_type<tc>, window_params = [{transform_indices = @transform_0, window_bounds = array<i64: 8, 16>}, {pipeline_mode = #tpu.pipeline_mode<synchronous>, transform_indices = @transform_1, window_bounds = array<i64: 272, 128>}, {pipeline_mode = #tpu.pipeline_mode<synchronous>, transform_indices = @transform_2, window_bounds = array<i64: 8, 128>}, {transform_indices = @transform_3, window_bounds = array<i64: 1, 8, 128>}]} {
    %c0_i32 = arith.constant 0 : i32
    %0 = arith.cmpi eq, %arg1, %c0_i32 : i32
    %1 = arith.extui %0 : i1 to i32
    %c0_i32_0 = arith.constant 0 : i32
    %2 = arith.cmpi ne, %1, %c0_i32_0 : i32
    scf.if %2 {
      %cst_19 = arith.constant 0.000000e+00 : f32
      %30 = vector.broadcast %cst_19 : f32 to vector<8x128xf32>
      %c0_20 = arith.constant 0 : index
      %c0_21 = arith.constant 0 : index
      %31 = vector.load %arg6[%c0_20, %c0_21] : memref<8x128xf32, #tpu.memory_space<vmem>>, vector<8x128xf32>
      tpu.vector_store %arg6[%c0_20, %c0_21], %30 {strides = array<i32>} : memref<8x128xf32, #tpu.memory_space<vmem>>, vector<8x128xf32>,
    } else {
    }
    %c0 = arith.constant 0 : index
    %c0_1 = arith.constant 0 : index
    %3 = vector.load %arg2[%c0, %c0_1] : memref<8x16xf32, #tpu.memory_space<vmem>>, vector<8x16xf32>
    %c0_2 = arith.constant 0 : index
    %c0_3 = arith.constant 0 : index
    %4 = vector.load %arg3[%c0_2, %c0_3] : memref<272x128xf32, #tpu.memory_space<vmem>>, vector<16x128xf32>
    %c16 = arith.constant 16 : index
    %c0_4 = arith.constant 0 : index
    %5 = vector.load %arg3[%c16, %c0_4] : memref<272x128xf32, #tpu.memory_space<vmem>>, vector<128x128xf32>
    %c144 = arith.constant 144 : index
    %c0_5 = arith.constant 0 : index
    %6 = vector.load %arg3[%c144, %c0_5] : memref<272x128xf32, #tpu.memory_space<vmem>>, vector<128x128xf32>
    %c0_6 = arith.constant 0 : index
    %c0_7 = arith.constant 0 : index
    %7 = vector.load %arg4[%c0_6, %c0_7] : memref<8x128xf32, #tpu.memory_space<vmem>>, vector<1x128xf32>
    %c1 = arith.constant 1 : index
    %c0_8 = arith.constant 0 : index
    %8 = vector.load %arg4[%c1, %c0_8] : memref<8x128xf32, #tpu.memory_space<vmem>>, vector<1x128xf32>
    %c2 = arith.constant 2 : index
    %c0_9 = arith.constant 0 : index
    %9 = vector.load %arg4[%c2, %c0_9] : memref<8x128xf32, #tpu.memory_space<vmem>>, vector<1x128xf32>
    %cst = arith.constant dense<0.000000e+00> : vector<8x128xf32>
    %10 = tpu.matmul %3, %4, %cst {dimension_numbers = #tpu.dot_dimension_numbers<[1], [0], [0], [1], [0, 0, 1, 1], [], []>} : vector<8x16xf32>, vector<16x128xf32>, vector<8x128xf32> -> vector<8x128xf32>
    %11 = vector.broadcast %7 : vector<1x128xf32> to vector<8x128xf32>
    %12 = arith.addf %10, %11 : vector<8x128xf32>
    %13 = math.tanh %12 : vector<8x128xf32>
    %cst_10 = arith.constant dense<0.000000e+00> : vector<8x128xf32>
    %14 = tpu.matmul %13, %5, %cst_10 {dimension_numbers = #tpu.dot_dimension_numbers<[1], [0], [0], [1], [0, 0, 1, 1], [], []>} : vector<8x128xf32>, vector<128x128xf32>, vector<8x128xf32> -> vector<8x128xf32>
    %15 = vector.broadcast %8 : vector<1x128xf32> to vector<8x128xf32>
    %16 = arith.addf %14, %15 : vector<8x128xf32>
    %17 = math.tanh %16 : vector<8x128xf32>
    %cst_11 = arith.constant dense<0.000000e+00> : vector<8x128xf32>
    %18 = tpu.matmul %17, %6, %cst_11 {dimension_numbers = #tpu.dot_dimension_numbers<[1], [0], [0], [1], [0, 0, 1, 1], [], []>} : vector<8x128xf32>, vector<128x128xf32>, vector<8x128xf32> -> vector<8x128xf32>
    %19 = vector.broadcast %9 : vector<1x128xf32> to vector<8x128xf32>
    %20 = arith.addf %18, %19 : vector<8x128xf32>
    %21 = arith.mulf %20, %20 : vector<8x128xf32>
    %c0_12 = arith.constant 0 : index
    %c0_13 = arith.constant 0 : index
    %22 = vector.load %arg6[%c0_12, %c0_13] : memref<8x128xf32, #tpu.memory_space<vmem>>, vector<8x128xf32>
    %23 = vector.shape_cast %21 : vector<8x128xf32> to vector<1x8x128xf32>
    %cst_14 = arith.constant dense<0.000000e+00> : vector<8x128xf32>
    %24 = vector.multi_reduction <add>, %23, %cst_14 [0] : vector<1x8x128xf32> to vector<8x128xf32>
    %25 = arith.addf %22, %24 : vector<8x128xf32>
    %c0_15 = arith.constant 0 : index
    %c0_16 = arith.constant 0 : index
    %26 = vector.load %arg6[%c0_15, %c0_16] : memref<8x128xf32, #tpu.memory_space<vmem>>, vector<8x128xf32>
    tpu.vector_store %arg6[%c0_15, %c0_16], %25 {strides = array<i32>} : memref<8x128xf32, #tpu.memory_space<vmem>>, vector<8x128xf32>,
    %c0_i32_17 = arith.constant 0 : i32
    %27 = arith.cmpi eq, %arg1, %c0_i32_17 : i32
    %28 = arith.extui %27 : i1 to i32
    %c0_i32_18 = arith.constant 0 : i32
    %29 = arith.cmpi ne, %28, %c0_i32_18 : i32
    scf.if %29 {
      %c0_19 = arith.constant 0 : index
      %c0_20 = arith.constant 0 : index
      %30 = vector.load %arg6[%c0_19, %c0_20] : memref<8x128xf32, #tpu.memory_space<vmem>>, vector<8x128xf32>
      %31 = vector.shape_cast %30 : vector<8x128xf32> to vector<1x8x128xf32>
      %c0_21 = arith.constant 0 : index
      %c0_22 = arith.constant 0 : index
      %c0_23 = arith.constant 0 : index
      %32 = vector.load %arg5[%c0_21, %c0_22, %c0_23] : memref<1x8x128xf32, #tpu.memory_space<vmem>>, vector<1x8x128xf32>
      tpu.vector_store %arg5[%c0_21, %c0_22, %c0_23], %31 {strides = array<i32>} : memref<1x8x128xf32, #tpu.memory_space<vmem>>, vector<1x8x128xf32>,
    } else {
    }
    return
  }
  func.func @transform_0(%arg0: i32, %arg1: i32) -> (i32, i32) {
    %c1_i32 = arith.constant 1 : i32
    %0 = arith.muli %arg0, %c1_i32 : i32
    %1 = arith.addi %0, %arg1 : i32
    %c0_i32 = arith.constant 0 : i32
    %c0_i32_0 = arith.constant 0 : i32
    return %1, %c0_i32 : i32, i32
  }
  func.func @transform_1(%arg0: i32, %arg1: i32) -> (i32, i32) {
    %c0_i32 = arith.constant 0 : i32
    %c0_i32_0 = arith.constant 0 : i32
    %c0_i32_1 = arith.constant 0 : i32
    return %c0_i32, %c0_i32_0 : i32, i32
  }
  func.func @transform_2(%arg0: i32, %arg1: i32) -> (i32, i32) {
    %c0_i32 = arith.constant 0 : i32
    %c0_i32_0 = arith.constant 0 : i32
    %c0_i32_1 = arith.constant 0 : i32
    return %c0_i32, %c0_i32_0 : i32, i32
  }
  func.func @transform_3(%arg0: i32, %arg1: i32) -> (i32, i32, i32) {
    %c0_i32 = arith.constant 0 : i32
    %c0_i32_0 = arith.constant 0 : i32
    %c0_i32_1 = arith.constant 0 : i32
    return %arg0, %c0_i32, %c0_i32_0 : i32, i32, i32
  }
}

</mosaic_0001>

<bundles_post_ra>
// kernel: tpu_custom_call.1
= control target key start
LH: loop header
LB: loop body
LE: loop exit
PB: predicated region body
PF: predicated region fallthrough
CT: control target
= control target key end

     0   :  { %8 = vsyncpa [#allocation4], 0  ;;  %s356_s0 = inlined_call_operand.hbm [shape: f32[8,16], index: 0, kind: input, shape index: {}]   ;;  %s357_s1 = inlined_call_operand.hbm [shape: f32[272,128], index: 1, kind: input, shape index: {}]   ;;  %s358_s2 = inlined_call_operand.hbm [shape: f32[8,128], index: 2, kind: input, shape index: {}]   ;;  %s359_s3 = inlined_call_operand.hbm [shape: f32[1,8,128], index: 3, kind: output, shape index: {}]  }
   0x1   :  { %9 = vsyncpa [#allocation7], 0  ;;  %s29_s14 = sshll.u32 %s357_s1, 4  ;;  %s30_s14 = int_to_ptr.hbm [resolvable:$true] %s29_s14 }
   0x2   :  { %10 = vsyncpa [#allocation5], 0  ;;  %s318_s15 = smov [#allocation6]   ;;  %s19_s19 = sshll.u32 %s356_s0, 4  ;;  %s20_s19 = int_to_ptr.hbm [resolvable:$true] %s19_s19 }
   0x3   :  { %s31_s16 = sshll.u32 %s318_s15, 4  ;;  %s319_s20 = smov 128   ;;  %s32_s16 = int_to_ptr.vmem [resolvable:$true] %s31_s16 }
   0x4   :  { %s320_s21 = smov 8   ;;  %s321_s22 = smov [#allocation3]  }
   0x5   :  { %37 = dma.hbm_to_vmem [thread:$0]  %s30_s14, 4352, %s32_s16, [#allocation7], %s319_s20, %s319_s20, %s320_s21  }
   0x6   :  { %s21_s23 = sshll.u32 %s321_s22, 4  ;;  %s43_s26 = sshll.u32 %s358_s2, 4  ;;  %s22_s23 = int_to_ptr.vmem [resolvable:$true] %s21_s23  ;;  %s44_s26 = int_to_ptr.hbm [resolvable:$true] %s43_s26 }
   0x7   :  { %24 = dma.hbm_to_vmem [thread:$0]  %s20_s19, 128, %s22_s23, [#allocation4]  }
   0x8   :  { %s322_s1 = smov [#allocation8]  }
   0x9   :  { %s45_s27 = sshll.u32 %s322_s1, 4  ;;  %s46_s27 = int_to_ptr.vmem [resolvable:$true] %s45_s27 }
   0xa   :  { %48 = dma.hbm_to_vmem [thread:$0]  %s44_s26, 128, %s46_s27, [#allocation7]  }
   0xb   :  { %312 = dma.done.wait [#allocation4], 128  }
   0xc   :  { %313 = vsyncadd [#allocation4], 4294967168 }
   0xd   :  { %314 = dma.done.wait [#allocation7], 4480  }
   0xe   :  { %315 = vsyncadd [#allocation7], 4294962816  ;;  %v69_v0 = vld [vmem:[#allocation6 + $0x8] sm:$0xff]  ;;  %v68_v1 = vld [vmem:[#allocation6] sm:$0xff]  ;;  %vm106_vm0 = vcmask 130048   ;;  %s323_s0 = smov [#allocation9]  }
   0xf   :  { %124 = vmatpush.msra.mxu0 %v69_v0  ;;  %v67_v2 = vld [vmem:[#allocation3] sm:$0xff]  ;;  %v85_v3 = vld [vmem:[#allocation6 + $0x88] sm:$0xff]  ;;  %v84_v4 = vld [vmem:[#allocation6 + $0x80] sm:$0xff]  ;;  %s189_s2 = sshll.u32 %s323_s0, 4  ;;  %s191_s30 = sshll.u32 %s359_s3, 4  ;;  %s190_s2 = int_to_ptr.vmem [resolvable:$true] %s189_s2  ;;  %s192_s30 = int_to_ptr.hbm [resolvable:$true] %s191_s30 }
  0x10   :  { %132 = vmatpush.msra.mxu1 %v85_v3  ;;  %v83_v5 = vld [vmem:[#allocation6 + $0x78] sm:$0xff]  ;;  %v82_v6 = vld [vmem:[#allocation6 + $0x70] sm:$0xff]  ;;  %v81_v7 = vld [vmem:[#allocation6 + $0x68] sm:$0xff] }
  0x11   :  { %125 = vmatpush.msra.mxu0 %v68_v1  ;;  %v80_v8 = vld [vmem:[#allocation6 + $0x60] sm:$0xff]  ;;  %v79_v9 = vld [vmem:[#allocation6 + $0x58] sm:$0xff]  ;;  %v78_v10 = vld [vmem:[#allocation6 + $0x50] sm:$0xff] }
  0x12   :  { %202 = vmatmul.msk.f32.vlgmr.msra.gmra.mxu0 %vm106_vm0, %v67_v2  ;;  %133 = vmatpush.msra.mxu1 %v84_v4  ;;  %v77_v11 = vld [vmem:[#allocation6 + $0x48] sm:$0xff]  ;;  %v76_v12 = vld [vmem:[#allocation6 + $0x40] sm:$0xff]  ;;  %v75_v13 = vld [vmem:[#allocation6 + $0x38] sm:$0xff] }
  0x13   :  { %v74_v14 = vld [vmem:[#allocation6 + $0x30] sm:$0xff]  ;;  %v73_v15 = vld [vmem:[#allocation6 + $0x28] sm:$0xff]  ;;  %v72_v16 = vld [vmem:[#allocation6 + $0x20] sm:$0xff] }
  0x14   :  { %134 = vmatpush.msra.mxu1 %v83_v5  ;;  %v71_v17 = vld [vmem:[#allocation6 + $0x18] sm:$0xff]  ;;  %v70_v18 = vld [vmem:[#allocation6 + $0x10] sm:$0xff]  ;;  %v101_v19 = vld [vmem:[#allocation6 + $0x108] sm:$0xff] }
  0x15   :  { %v100_v20 = vld [vmem:[#allocation6 + $0x100] sm:$0xff]  ;;  %154 = vmatpush.msra.mxu2 %v101_v19  ;;  %v99_v21 = vld [vmem:[#allocation6 + $0xf8] sm:$0xff]  ;;  %v98_v22 = vld [vmem:[#allocation6 + $0xf0] sm:$0xff] }
  0x16   :  { %135 = vmatpush.msra.mxu1 %v82_v6  ;;  %v97_v23 = vld [vmem:[#allocation6 + $0xe8] sm:$0xff]  ;;  %v96_v24 = vld [vmem:[#allocation6 + $0xe0] sm:$0xff]  ;;  %v95_v25 = vld [vmem:[#allocation6 + $0xd8] sm:$0xff] }
  0x17   :  { %155 = vmatpush.msra.mxu2 %v100_v20  ;;  %v94_v26 = vld [vmem:[#allocation6 + $0xd0] sm:$0xff]  ;;  %v93_v27 = vld [vmem:[#allocation6 + $0xc8] sm:$0xff]  ;;  %v92_v28 = vld [vmem:[#allocation6 + $0xc0] sm:$0xff] }
  0x18   :  { %136 = vmatpush.msra.mxu1 %v81_v7  ;;  %v91_v29 = vld [vmem:[#allocation6 + $0xb8] sm:$0xff]  ;;  %v209_v30 = vld [vmem:[#allocation8] ss:$0 sm:$0xff]  ;;  %v89_v35 = vld [vmem:[#allocation6 + $0xa8] sm:$0xff] }
  0x19   :  { %156 = vmatpush.msra.mxu2 %v99_v21  ;;  %v90_v34 = vld [vmem:[#allocation6 + $0xb0] sm:$0xff]  ;;  %v88_v36 = vld [vmem:[#allocation6 + $0xa0] sm:$0xff]  ;;  %v87_v37 = vld [vmem:[#allocation6 + $0x98] sm:$0xff] }
  0x1a   :  { %137 = vmatpush.msra.mxu1 %v80_v8  ;;  %v86_v38 = vld [vmem:[#allocation6 + $0x90] sm:$0xff] }
  0x1b   :  { %157 = vmatpush.msra.mxu2 %v98_v22  ;;  %v210_v39 = vld [vmem:[#allocation8 + $0x1] ss:$0 sm:$0xff]  ;;  %v211_v43 = vld [vmem:[#allocation8 + $0x2] ss:$0 sm:$0xff] }
  0x1c   :  { %138 = vmatpush.msra.mxu1 %v79_v9 }
  0x1d   :  { %158 = vmatpush.msra.mxu2 %v97_v23 }
  0x1e   :  { %139 = vmatpush.msra.mxu1 %v78_v10 }
  0x1f   :  { %159 = vmatpush.msra.mxu2 %v96_v24 }
  0x20   :  { %140 = vmatpush.msra.mxu1 %v77_v11 }
  0x21   :  { %160 = vmatpush.msra.mxu2 %v95_v25 }
  0x22   :  { %141 = vmatpush.msra.mxu1 %v76_v12 }
  0x23   :  { %161 = vmatpush.msra.mxu2 %v94_v26 }
  0x24   :  { %142 = vmatpush.msra.mxu1 %v75_v13 }
  0x25   :  { %162 = vmatpush.msra.mxu2 %v93_v27 }
  0x26   :  { %143 = vmatpush.msra.mxu1 %v74_v14 }
  0x27   :  { %163 = vmatpush.msra.mxu2 %v92_v28 }
  0x28   :  { %144 = vmatpush.msra.mxu1 %v73_v15 }
  0x29   :  { %164 = vmatpush.msra.mxu2 %v91_v29 }
  0x2a   :  { %145 = vmatpush.msra.mxu1 %v72_v16 }
  0x2b   :  { %165 = vmatpush.msra.mxu2 %v90_v34 }
  0x2c   :  { %146 = vmatpush.msra.mxu1 %v71_v17 }
  0x2d   :  { %166 = vmatpush.msra.mxu2 %v89_v35 }
  0x2e   :  { %147 = vmatpush.msra.mxu1 %v70_v18 }
  0x2f   :  { %167 = vmatpush.msra.mxu2 %v88_v36 }
  0x31   :  { %168 = vmatpush.msra.mxu2 %v87_v37 }
  0x33   :  { %169 = vmatpush.msra.mxu2 %v86_v38 }
  0x8f   :  { %v127_v31 = vpop.f32.mrf.mxu0 }
  0x90   :  { %v128_v32 = vadd.f32 %v209_v30, %v127_v31 }
  0x92   :  { %212 = vtanh.f32 %v128_v32 }
  0x98   :  { %v213_v33 = vpop.eup %212 }
  0x99   :  { %148 = vmatmul.f32.vlgmr.msra.gmra.mxu1 %v213_v33 }
 0x116   :  { %v149_v40 = vpop.f32.mrf.mxu1 }
 0x117   :  { %v150_v41 = vadd.f32 %v210_v39, %v149_v40 }
 0x119   :  { %214 = vtanh.f32 %v150_v41 }
 0x11f   :  { %v215_v42 = vpop.eup %214 }
 0x120   :  { %170 = vmatmul.f32.vlgmr.msra.gmra.mxu2 %v215_v42 }
 0x1a3   :  { %v171_v44 = vpop.f32.mrf.mxu2 }
 0x1a4   :  { %v172_v45 = vadd.f32 %v211_v43, %v171_v44 }
 0x1a6   :  { %v174_v46 = vmul.f32 %v172_v45, %v172_v45 }
 0x1a8   :  { %183 = vst [vmem:[#allocation9] sm:$0xff] %v174_v46 }
 0x1a9   :  { %194 = dma.vmem_to_hbm [thread:$0]  %s190_s2, 128, %s192_s30, [#allocation5]  }
 0x1aa   :  { %316 = dma.done.wait [#allocation5], 128  }
 0x1ab   :  { %317 = vsyncadd [#allocation5], 4294967168 }
 0x1ac   :  { %199 = vsyncpa [#allocation4], 1 }
 0x1ad   :  { %200 = vsyncpa [#allocation7], 1 }
 0x1ae   :  { %201 = vsyncpa [#allocation5], 1 }

</bundles_post_ra>
